<compile_context>
chip_gen: v7x
topology: tpu7x:2x2x1
jax: 0.10.0
libtpu: 0.0.40
codegen_flags: <defaults>
</compile_context>

<pallas_src>
import numpy as np
import jax
import jax.numpy as jnp
from jax.experimental import pallas as pl
from jax.experimental.pallas import tpu as pltpu


def _make_kernel(num_hidden):
    """Kernel computing one node-tile of the TopoMLP forward per grid step."""

    def kernel(binary_ref, x_ref, w0_ref, b0_ref, *rest):
        o_ref = rest[-1]
        hidden = rest[:-1]                  # interleaved (W_blockdiag, bias) per hidden layer
        # Layer 0: one fused MXU matmul over the whole node tile:
        #   (n, d) @ (d, T*d1) -> (n, T*d1)
        h = jnp.dot(x_ref[...], w0_ref[...], preferred_element_type=jnp.float32)
        h = h + b0_ref[...]
        # Hidden layers: per-node weights packed block-diagonally, so each layer
        # is still a lane-dense 2-D matmul (no in-kernel reshapes/transposes).
        for l in range(num_hidden):
            w = hidden[2 * l][...]          # (T*in_l, T*out_l)
            b = hidden[2 * l + 1][...]      # (1, T*out_l)
            h = jax.nn.sigmoid(h)
            h = jnp.dot(h, w, preferred_element_type=jnp.float32) + b
        # Final sigmoid iff the input was binary (computed once in the wrapper,
        # delivered as an SMEM scalar via scalar prefetch).
        is_binary = binary_ref[0] != 0
        h = jnp.where(is_binary, jax.nn.sigmoid(h), h)
        o_ref[...] = h.astype(o_ref.dtype)  # (n, T) lane-dense block of (n, d)

    return kernel


def topo_mlp_forward(x, weights, biases):
    """Pallas TopoMLP forward.

    Args:
      x:       (n, d) float32
      weights: list; weights[l] has shape (d, in_l, out_l)
               (layer 0: in_0 = d, out_0 = d1; last layer out = 1)
      biases:  list; biases[l] has shape (d, 1, out_l)
    Returns:
      (n, d) float32, matching torch.cat([f_i(x)], dim=1)
    """
    x = jnp.asarray(x, jnp.float32)
    n, d_in = x.shape
    d = int(weights[0].shape[0])
    assert d_in == d, "x feature dim must equal number of nodes d"
    d1 = int(weights[0].shape[2])
    num_layers = len(weights)
    num_hidden = num_layers - 1

    # Node-tile size: all d nodes in one grid step for small d (the common DAG
    # learning regime); otherwise 128-node lane-aligned tiles so every block's
    # lane width is a multiple of 128.
    tile = d if d <= 128 else 128
    d_pad = -(-d // tile) * tile
    num_tiles = d_pad // tile

    def pad_nodes(a):
        if d_pad == d:
            return a
        return jnp.pad(a, [(0, d_pad - d)] + [(0, 0)] * (a.ndim - 1))

    # ---- Layer 0 fused across the node axis ----
    # W0f[k, t*d1 + j] = W0[t, k, j];  b0f[0, t*d1 + j] = b0[t, 0, j]
    w0 = pad_nodes(jnp.asarray(weights[0], jnp.float32))           # (d_pad, d, d1)
    w0f = jnp.transpose(w0, (1, 0, 2)).reshape(d, d_pad * d1)      # (d, d_pad*d1)
    b0f = pad_nodes(jnp.asarray(biases[0], jnp.float32)).reshape(1, d_pad * d1)

    # ---- Hidden layers: block-diagonal per-tile weights + fused biases ----
    hidden_args, hidden_specs, hidden_dims = [], [], []
    eye = jnp.eye(tile, dtype=jnp.float32)
    for l in range(1, num_layers):
        w = pad_nodes(jnp.asarray(weights[l], jnp.float32))        # (d_pad, in_l, out_l)
        b = pad_nodes(jnp.asarray(biases[l], jnp.float32))         # (d_pad, 1, out_l)
        in_l, out_l = int(w.shape[1]), int(w.shape[2])
        hidden_dims.append((in_l, out_l))
        wg = w.reshape(num_tiles, tile, in_l, out_l)
        w_bd = jnp.einsum("gtio,ts->gtiso", wg, eye).reshape(
            num_tiles, tile * in_l, tile * out_l)
        b_f = b.reshape(num_tiles, 1, tile * out_l)
        hidden_args += [w_bd, b_f]
        hidden_specs += [
            pl.BlockSpec((pl.Squeezed(), tile * in_l, tile * out_l),
                         lambda t, _s: (t, 0, 0)),
            pl.BlockSpec((pl.Squeezed(), 1, tile * out_l),
                         lambda t, _s: (t, 0, 0)),
        ]

    # Binary-input check hoisted out of the kernel (constant over the call).
    binary = jnp.all(jnp.logical_or(x == 0.0, x == 1.0))
    binary_i32 = binary.astype(jnp.int32).reshape((1,))

    in_specs = [
        pl.BlockSpec((n, d), lambda t, _s: (0, 0)),                # x (resident)
        pl.BlockSpec((d, tile * d1), lambda t, _s: (0, t)),        # fused W0 tile
        pl.BlockSpec((1, tile * d1), lambda t, _s: (0, t)),        # fused b0 tile
    ] + hidden_specs
    out_spec = pl.BlockSpec((n, tile), lambda t, _s: (0, t))       # lane-dense output

    # Advisory cost estimate for XLA scheduling.
    flops = 2 * n * d * d_pad * d1
    transc = n * d_pad                                             # possible final sigmoid
    param_bytes = 4 * (d * d_pad * d1 + d_pad * d1)
    for in_l, out_l in hidden_dims:
        flops += 2 * n * d_pad * tile * in_l * out_l
        transc += n * d_pad * in_l
        param_bytes += 4 * (d_pad * tile * in_l * out_l + d_pad * out_l)
    bytes_accessed = 4 * n * d + param_bytes + 4 * n * d_pad
    cost = pl.CostEstimate(flops=int(flops), transcendentals=int(transc),
                           bytes_accessed=int(bytes_accessed))

    # Explicit VMEM budget with headroom; stays within v7x's 64 MiB physical VMEM.
    vmem_limit = int(min(64 << 20, max(32 << 20, 4 * bytes_accessed)))

    out = pl.pallas_call(
        _make_kernel(num_hidden),
        out_shape=jax.ShapeDtypeStruct((n, d_pad), jnp.float32),
        grid_spec=pltpu.PrefetchScalarGridSpec(
            num_scalar_prefetch=1,
            grid=(num_tiles,),
            in_specs=in_specs,
            out_specs=out_spec,
        ),
        compiler_params=pltpu.CompilerParams(
            dimension_semantics=("parallel",),
            vmem_limit_bytes=vmem_limit,
        ),
        cost_estimate=cost,
    )(binary_i32, x, w0f, b0f, *hidden_args)
    return out[:, :d]


def topo_mlp_reference(x, weights, biases):
    """Pure-JAX reference mirroring the PyTorch forward exactly."""
    x = jnp.asarray(x, jnp.float32)
    d = weights[0].shape[0]
    binary = jnp.all(jnp.logical_or(x == 0.0, x == 1.0))
    cols = []
    for i in range(d):
        h = x
        for li, (w, b) in enumerate(zip(weights, biases)):
            if li > 0:
                h = jax.nn.sigmoid(h)
            h = h @ w[i] + b[i]
        h = jnp.where(binary, jax.nn.sigmoid(h), h)
        cols.append(h)
    return jnp.concatenate(cols, axis=1)


def _make_params(key, dims):
    """Synthetic per-node parameters matching the module's __init__ shapes."""
    d, d1 = dims[0], dims[1]
    keys = jax.random.split(key, 2 * (len(dims) - 1))
    weights, biases = [], []
    # layer 0: d*d Linear(1, d1) columns per node -> (d, d, d1); bias (d, 1, d1)
    weights.append(0.1 * jax.random.normal(keys[0], (d, d, d1), dtype=jnp.float32))
    biases.append(0.1 * jax.random.normal(keys[1], (d, 1, d1), dtype=jnp.float32))
    kidx = 2
    for l in range(1, len(dims) - 1):
        in_l, out_l = dims[l], dims[l + 1]
        weights.append(0.1 * jax.random.normal(keys[kidx], (d, in_l, out_l), dtype=jnp.float32))
        biases.append(0.1 * jax.random.normal(keys[kidx + 1], (d, 1, out_l), dtype=jnp.float32))
        kidx += 2
    return weights, biases


if __name__ == "__main__":
    key = jax.random.PRNGKey(0)
    k_x, k_p, k_x2, k_p2 = jax.random.split(key, 4)

    # Config 1: dims as in TopoMLP(dims=[d, d1, d2, 1]), batch n=8.
    dims = [4, 32, 16, 1]
    n = 8
    weights, biases = _make_params(k_p, dims)
    x = jax.random.normal(k_x, (n, dims[0]), dtype=jnp.float32)

    out = jax.block_until_ready(topo_mlp_forward(x, weights, biases))
    ref = topo_mlp_reference(x, weights, biases)
    assert out.shape == (n, dims[0]), f"bad output shape {out.shape}"
    assert np.allclose(np.asarray(out), np.asarray(ref), rtol=1e-5, atol=1e-5), \
        "mismatch vs reference"

    # Binary-input branch (final sigmoid applied).
    xb = (jax.random.uniform(k_x, (n, dims[0])) > 0.5).astype(jnp.float32)
    outb = jax.block_until_ready(topo_mlp_forward(xb, weights, biases))
    refb = topo_mlp_reference(xb, weights, biases)
    assert np.allclose(np.asarray(outb), np.asarray(refb), rtol=1e-5, atol=1e-5), \
        "mismatch (binary) vs reference"

    # Config 2: awkward (non-8/128-aligned) batch and node count, shallower net.
    dims2 = [6, 16, 8, 1]
    n2 = 5
    weights2, biases2 = _make_params(k_p2, dims2)
    x2 = jax.random.normal(k_x2, (n2, dims2[0]), dtype=jnp.float32)
    out2 = jax.block_until_ready(topo_mlp_forward(x2, weights2, biases2))
    ref2 = topo_mlp_reference(x2, weights2, biases2)
    assert np.allclose(np.asarray(out2), np.asarray(ref2), rtol=1e-5, atol=1e-5), \
        "mismatch (config 2) vs reference"

    print("KERNEL_OK")
</pallas_src>

<mosaic_0001>
module attributes {stable_mosaic.version = 11 : i64} {
  func.func @kernel(%arg0: i32, %arg1: memref<1xi32, #tpu.memory_space<smem>>, %arg2: memref<8x4xf32, #tpu.memory_space<vmem>>, %arg3: memref<4x128xf32, #tpu.memory_space<vmem>>, %arg4: memref<1x128xf32, #tpu.memory_space<vmem>>, %arg5: memref<1x128x64xf32, #tpu.memory_space<vmem>>, %arg6: memref<1x1x64xf32, #tpu.memory_space<vmem>>, %arg7: memref<1x64x4xf32, #tpu.memory_space<vmem>>, %arg8: memref<1x1x4xf32, #tpu.memory_space<vmem>>, %arg9: memref<8x4xf32, #tpu.memory_space<vmem>>) attributes {dimension_semantics = [#tpu.dimension_semantics<parallel>], iteration_bounds = array<i64: 1>, scalar_prefetch = 1 : i64, scratch_operands = 0 : i64, tpu.core_type = #tpu.core_type<tc>, window_params = [{pipeline_mode = #tpu.pipeline_mode<synchronous>, transform_indices = @transform_0, window_bounds = array<i64: 8, 4>}, {transform_indices = @transform_1, window_bounds = array<i64: 4, 128>}, {transform_indices = @transform_2, window_bounds = array<i64: 1, 128>}, {transform_indices = @transform_3, window_bounds = array<i64: 1, 128, 64>}, {transform_indices = @transform_4, window_bounds = array<i64: 1, 1, 64>}, {transform_indices = @transform_5, window_bounds = array<i64: 1, 64, 4>}, {transform_indices = @transform_6, window_bounds = array<i64: 1, 1, 4>}, {transform_indices = @transform_7, window_bounds = array<i64: 8, 4>}]} {
    %c0 = arith.constant 0 : index
    %c0_0 = arith.constant 0 : index
    %0 = vector.load %arg2[%c0, %c0_0] : memref<8x4xf32, #tpu.memory_space<vmem>>, vector<8x4xf32>
    %c0_1 = arith.constant 0 : index
    %c0_2 = arith.constant 0 : index
    %1 = vector.load %arg3[%c0_1, %c0_2] : memref<4x128xf32, #tpu.memory_space<vmem>>, vector<4x128xf32>
    %cst = arith.constant dense<0.000000e+00> : vector<8x128xf32>
    %2 = tpu.matmul %0, %1, %cst {dimension_numbers = #tpu.dot_dimension_numbers<[1], [0], [0], [1], [0, 0, 1, 1], [], []>} : vector<8x4xf32>, vector<4x128xf32>, vector<8x128xf32> -> vector<8x128xf32>
    %c0_3 = arith.constant 0 : index
    %c0_4 = arith.constant 0 : index
    %3 = vector.load %arg4[%c0_3, %c0_4] : memref<1x128xf32, #tpu.memory_space<vmem>>, vector<1x128xf32>
    %4 = vector.broadcast %3 : vector<1x128xf32> to vector<8x128xf32>
    %5 = arith.addf %2, %4 : vector<8x128xf32>
    %c0_5 = arith.constant 0 : index
    %c0_6 = arith.constant 0 : index
    %c0_7 = arith.constant 0 : index
    %6 = vector.load %arg5[%c0_5, %c0_6, %c0_7] : memref<1x128x64xf32, #tpu.memory_space<vmem>>, vector<1x128x64xf32>
    %7 = vector.shape_cast %6 : vector<1x128x64xf32> to vector<128x64xf32>
    %c0_8 = arith.constant 0 : index
    %c0_9 = arith.constant 0 : index
    %c0_10 = arith.constant 0 : index
    %8 = vector.load %arg6[%c0_8, %c0_9, %c0_10] : memref<1x1x64xf32, #tpu.memory_space<vmem>>, vector<1x1x64xf32>
    %9 = vector.shape_cast %8 : vector<1x1x64xf32> to vector<1x64xf32>
    %10 = arith.negf %5 : vector<8x128xf32>
    %11 = math.exp %10 : vector<8x128xf32>
    %cst_11 = arith.constant 1.000000e+00 : f32
    %12 = vector.broadcast %cst_11 : f32 to vector<8x128xf32>
    %13 = arith.addf %12, %11 : vector<8x128xf32>
    %14 = arith.divf %12, %13 : vector<8x128xf32>
    %cst_12 = arith.constant dense<0.000000e+00> : vector<8x64xf32>
    %15 = tpu.matmul %14, %7, %cst_12 {dimension_numbers = #tpu.dot_dimension_numbers<[1], [0], [0], [1], [0, 0, 1, 1], [], []>} : vector<8x128xf32>, vector<128x64xf32>, vector<8x64xf32> -> vector<8x64xf32>
    %16 = vector.broadcast %9 : vector<1x64xf32> to vector<8x64xf32>
    %17 = arith.addf %15, %16 : vector<8x64xf32>
    %c0_13 = arith.constant 0 : index
    %c0_14 = arith.constant 0 : index
    %c0_15 = arith.constant 0 : index
    %18 = vector.load %arg7[%c0_13, %c0_14, %c0_15] : memref<1x64x4xf32, #tpu.memory_space<vmem>>, vector<1x64x4xf32>
    %19 = vector.shape_cast %18 : vector<1x64x4xf32> to vector<64x4xf32>
    %c0_16 = arith.constant 0 : index
    %c0_17 = arith.constant 0 : index
    %c0_18 = arith.constant 0 : index
    %20 = vector.load %arg8[%c0_16, %c0_17, %c0_18] : memref<1x1x4xf32, #tpu.memory_space<vmem>>, vector<1x1x4xf32>
    %21 = vector.shape_cast %20 : vector<1x1x4xf32> to vector<1x4xf32>
    %22 = arith.negf %17 : vector<8x64xf32>
    %23 = math.exp %22 : vector<8x64xf32>
    %cst_19 = arith.constant 1.000000e+00 : f32
    %24 = vector.broadcast %cst_19 : f32 to vector<8x64xf32>
    %25 = arith.addf %24, %23 : vector<8x64xf32>
    %26 = arith.divf %24, %25 : vector<8x64xf32>
    %cst_20 = arith.constant dense<0.000000e+00> : vector<8x4xf32>
    %27 = tpu.matmul %26, %19, %cst_20 {dimension_numbers = #tpu.dot_dimension_numbers<[1], [0], [0], [1], [0, 0, 1, 1], [], []>} : vector<8x64xf32>, vector<64x4xf32>, vector<8x4xf32> -> vector<8x4xf32>
    %28 = vector.broadcast %21 : vector<1x4xf32> to vector<8x4xf32>
    %29 = arith.addf %27, %28 : vector<8x4xf32>
    %c0_21 = arith.constant 0 : index
    %30 = memref.load %arg1[%c0_21] : memref<1xi32, #tpu.memory_space<smem>>
    %c0_i32 = arith.constant 0 : i32
    %31 = arith.cmpi ne, %30, %c0_i32 : i32
    %32 = arith.negf %29 : vector<8x4xf32>
    %33 = math.exp %32 : vector<8x4xf32>
    %cst_22 = arith.constant 1.000000e+00 : f32
    %34 = vector.broadcast %cst_22 : f32 to vector<8x4xf32>
    %35 = arith.addf %34, %33 : vector<8x4xf32>
    %36 = arith.divf %34, %35 : vector<8x4xf32>
    %37 = arith.select %31, %36, %29 : vector<8x4xf32>
    %c0_23 = arith.constant 0 : index
    %c0_24 = arith.constant 0 : index
    %38 = vector.load %arg9[%c0_23, %c0_24] : memref<8x4xf32, #tpu.memory_space<vmem>>, vector<8x4xf32>
    tpu.vector_store %arg9[%c0_23, %c0_24], %37 {strides = array<i32>} : memref<8x4xf32, #tpu.memory_space<vmem>>, vector<8x4xf32>,
    return
  }
  func.func @transform_0(%arg0: i32, %arg1: memref<1xi32, #tpu.memory_space<smem>>) -> (i32, i32) {
    %c0_i32 = arith.constant 0 : i32
    %c0_i32_0 = arith.constant 0 : i32
    %c0_i32_1 = arith.constant 0 : i32
    return %c0_i32, %c0_i32_0 : i32, i32
  }
  func.func @transform_1(%arg0: i32, %arg1: memref<1xi32, #tpu.memory_space<smem>>) -> (i32, i32) {
    %c0_i32 = arith.constant 0 : i32
    %c0_i32_0 = arith.constant 0 : i32
    return %c0_i32, %arg0 : i32, i32
  }
  func.func @transform_2(%arg0: i32, %arg1: memref<1xi32, #tpu.memory_space<smem>>) -> (i32, i32) {
    %c0_i32 = arith.constant 0 : i32
    %c0_i32_0 = arith.constant 0 : i32
    return %c0_i32, %arg0 : i32, i32
  }
  func.func @transform_3(%arg0: i32, %arg1: memref<1xi32, #tpu.memory_space<smem>>) -> (i32, i32, i32) {
    %c0_i32 = arith.constant 0 : i32
    %c0_i32_0 = arith.constant 0 : i32
    %c0_i32_1 = arith.constant 0 : i32
    return %arg0, %c0_i32, %c0_i32_0 : i32, i32, i32
  }
  func.func @transform_4(%arg0: i32, %arg1: memref<1xi32, #tpu.memory_space<smem>>) -> (i32, i32, i32) {
    %c0_i32 = arith.constant 0 : i32
    %c0_i32_0 = arith.constant 0 : i32
    %c0_i32_1 = arith.constant 0 : i32
    return %arg0, %c0_i32, %c0_i32_0 : i32, i32, i32
  }
  func.func @transform_5(%arg0: i32, %arg1: memref<1xi32, #tpu.memory_space<smem>>) -> (i32, i32, i32) {
    %c0_i32 = arith.constant 0 : i32
    %c0_i32_0 = arith.constant 0 : i32
    %c0_i32_1 = arith.constant 0 : i32
    return %arg0, %c0_i32, %c0_i32_0 : i32, i32, i32
  }
  func.func @transform_6(%arg0: i32, %arg1: memref<1xi32, #tpu.memory_space<smem>>) -> (i32, i32, i32) {
    %c0_i32 = arith.constant 0 : i32
    %c0_i32_0 = arith.constant 0 : i32
    %c0_i32_1 = arith.constant 0 : i32
    return %arg0, %c0_i32, %c0_i32_0 : i32, i32, i32
  }
  func.func @transform_7(%arg0: i32, %arg1: memref<1xi32, #tpu.memory_space<smem>>) -> (i32, i32) {
    %c0_i32 = arith.constant 0 : i32
    %c0_i32_0 = arith.constant 0 : i32
    return %c0_i32, %arg0 : i32, i32
  }
}

</mosaic_0001>

<bundles_post_ra>
// kernel: tpu_custom_call.1
= control target key start
LH: loop header
LB: loop body
LE: loop exit
PB: predicated region body
PF: predicated region fallthrough
CT: control target
= control target key end

     0   :  { %vm41_vm0 = vcmask 1043456   ;;  %vm37_vm1 = vcmask 31744   ;;  %v473_v0 = vmov 0.0   ;;  %vm474_vm2 = vmmov 0   ;;  %s628_s2 = inlined_call_operand.vmem [shape: f32[4,128], index: 2, kind: input, shape index: {}]   ;;  %s629_s1 = inlined_call_operand.vmem [shape: f32[8,4], index: 1, kind: input, shape index: {}]   ;;  %s630_s4 = inlined_call_operand.vmem [shape: f32[1,128,64], index: 4, kind: input, shape index: {}]   ;;  %s631_s3 = inlined_call_operand.vmem [shape: f32[1,128], index: 3, kind: input, shape index: {}]   ;;  %s632_s6 = inlined_call_operand.vmem [shape: f32[1,64,4], index: 6, kind: input, shape index: {}]   ;;  %s633_s5 = inlined_call_operand.vmem [shape: f32[1,1,64], index: 5, kind: input, shape index: {}]   ;;  %s634_s7 = inlined_call_operand.vmem [shape: f32[1,1,4], index: 7, kind: input, shape index: {}]   ;;  %s635_s0 = inlined_call_operand.<no memory space> [shape: s32[1], index: 0, kind: input, shape index: {}]   ;;  %s636_s8 = inlined_call_operand.vmem [shape: f32[8,4], index: 8, kind: output, shape index: {}]  }
   0x1   :  { %363 = vmatprep.subr.mxu0 %v473_v0  ;;  %v29_v1 = vld [vmem:[%s628_s2] sm:$0xf]  ;;  %365 = vmatprep.mubr.msk.f32.mxu0 %vm474_vm2, %v473_v0  ;;  %v475_v4 = vmov 0.0|0.0   ;;  %v116_v5 = vld [vmem:[%s630_s4 + $0x8] sm:$0xff]  ;;  %v117_v7 = vld [vmem:[%s630_s4 + $0x10] sm:$0xff]  ;;  %vm235_vm3 = vcmask 523264  }
   0x2   :  { %v28_v2 = vld [vmem:[%s629_s1] sm:$0xff]  ;;  %364 = vmatpush3.msk.msra.mxu0 %vm41_vm0, %v29_v1  ;;  %422 = vmatprep.subr.bf16.mxu1 %v475_v4  ;;  %v118_v8 = vld [vmem:[%s630_s4 + $0x18] sm:$0xff]  ;;  %v120_v11 = vld [vmem:[%s630_s4 + $0x28] sm:$0xff]  ;;  %p310_p0 = scmp.ne.s32.totalorder %s635_s0, 0 }
   0x3   :  { %v115_v3 = vld [vmem:[%s630_s4] sm:$0xff]  ;;  %366 = vmatmul.mubr.msk.f32.vlgmr.msra.gmra.mrb[0].mxu0 %vm37_vm1, %v28_v2  ;;  %400 = vmatprep.mubr.msk.f32.mxu1 %vm474_vm2, %v473_v0  ;;  %v426_v9 = vpack.c.bf16 %v118_v8, %v117_v7  ;;  %v121_v13 = vld [vmem:[%s630_s4 + $0x30] sm:$0xff]  ;;  %v122_v14 = vld [vmem:[%s630_s4 + $0x38] sm:$0xff] }
   0x4   :  { %v423_v6 = vpack.c.bf16 %v116_v5, %v115_v3  ;;  %446 = vmatprep.subr.bf16.mxu0 %v475_v4  ;;  %419 = vmatprep.mubr.msk.f32.mxu0 %vm474_vm2, %v473_v0  ;;  %v119_v10 = vld [vmem:[%s630_s4 + $0x20] sm:$0xff]  ;;  %v432_v15 = vpack.c.bf16 %v122_v14, %v121_v13  ;;  %v124_v17 = vld [vmem:[%s630_s4 + $0x48] sm:$0xff]  ;;  %v125_v19 = vld [vmem:[%s630_s4 + $0x50] sm:$0xff]  ;;  %s317_s1 = scalar_select %p310_p0, 1, 0 }
   0x5   :  { %v429_v12 = vpack.c.bf16 %v120_v11, %v119_v10  ;;  %v123_v16 = vld [vmem:[%s630_s4 + $0x40] sm:$0xff]  ;;  %v126_v20 = vld [vmem:[%s630_s4 + $0x58] sm:$0xff]  ;;  %v128_v23 = vld [vmem:[%s630_s4 + $0x68] sm:$0xff] }
   0x6   :  { %424 = vmatpush3.bf16.msra.mxu1 %v423_v6  ;;  %v435_v18 = vpack.c.bf16 %v124_v17, %v123_v16  ;;  %v438_v21 = vpack.c.bf16 %v126_v20, %v125_v19  ;;  %v127_v22 = vld [vmem:[%s630_s4 + $0x60] sm:$0xff]  ;;  %v129_v25 = vld [vmem:[%s630_s4 + $0x70] sm:$0xff]  ;;  %v130_v26 = vld [vmem:[%s630_s4 + $0x78] sm:$0xff]  ;;  %v318_v63 = vstv %s317_s1 }
   0x7   :  { %425 = vmatprep.subr.bf16.mxu1 %v475_v4  ;;  %v441_v24 = vpack.c.bf16 %v128_v23, %v127_v22  ;;  %v444_v27 = vpack.c.bf16 %v130_v26, %v129_v25  ;;  %v326_v28 = vld [vmem:[%s631_s3] ss:$0 sm:$0xff]  ;;  %v215_v37 = vld [vmem:[%s632_s6 + $0x8] sm:$0xff]  ;;  %v216_v39 = vld [vmem:[%s632_s6 + $0x10] sm:$0xff]  ;;  %vm319_vm4 = vcmp.eq.s32.totalorder %v318_v63, 1 }
   0x8   :  { %v214_v36 = vld [vmem:[%s632_s6] sm:$0xff]  ;;  %v217_v40 = vld [vmem:[%s632_s6 + $0x18] sm:$0xff]  ;;  %v219_v43 = vld [vmem:[%s632_s6 + $0x28] sm:$0xff] }
   0x9   :  { %v447_v38 = vpack.c.bf16 %v215_v37, %v214_v36  ;;  %v450_v41 = vpack.c.bf16 %v217_v40, %v216_v39  ;;  %v218_v42 = vld [vmem:[%s632_s6 + $0x20] sm:$0xff]  ;;  %v220_v45 = vld [vmem:[%s632_s6 + $0x30] sm:$0xff]  ;;  %v221_v46 = vld [vmem:[%s632_s6 + $0x38] sm:$0xff] }
   0xa   :  { %427 = vmatpush3.bf16.msra.mxu1 %v426_v9  ;;  %v453_v44 = vpack.c.bf16 %v219_v43, %v218_v42  ;;  %v456_v47 = vpack.c.bf16 %v221_v46, %v220_v45  ;;  %v330_v48 = vld [vmem:[%s633_s5] ss:$0 sm:$0xff] }
   0xb   :  { %428 = vmatprep.subr.bf16.mxu1 %v475_v4  ;;  %448 = vmatpush3.bf16.msra.mxu0 %v447_v38  ;;  %v332_v56 = vld [vmem:[%s634_s7] ss:$0 sm:$0xff] }
   0xc   :  { %449 = vmatprep.subr.bf16.mxu0 %v475_v4 }
   0xe   :  { %430 = vmatpush3.bf16.msra.mxu1 %v429_v12 }
   0xf   :  { %431 = vmatprep.subr.bf16.mxu1 %v475_v4  ;;  %451 = vmatpush3.bf16.msra.mxu0 %v450_v41 }
  0x10   :  { %452 = vmatprep.subr.bf16.mxu0 %v475_v4 }
  0x12   :  { %433 = vmatpush3.bf16.msra.mxu1 %v432_v15 }
  0x13   :  { %434 = vmatprep.subr.bf16.mxu1 %v475_v4  ;;  %454 = vmatpush3.bf16.msra.mxu0 %v453_v44 }
  0x14   :  { %455 = vmatprep.subr.bf16.mxu0 %v475_v4 }
  0x16   :  { %436 = vmatpush3.bf16.msra.mxu1 %v435_v18 }
  0x17   :  { %437 = vmatprep.subr.bf16.mxu1 %v475_v4  ;;  %457 = vmatpush3.bf16.msra.mxu0 %v456_v47 }
  0x1a   :  { %439 = vmatpush3.bf16.msra.mxu1 %v438_v21 }
  0x1b   :  { %440 = vmatprep.subr.bf16.mxu1 %v475_v4 }
  0x1e   :  { %442 = vmatpush3.bf16.msra.mxu1 %v441_v24 }
  0x1f   :  { %443 = vmatprep.subr.bf16.mxu1 %v475_v4 }
  0x22   :  { %445 = vmatpush3.bf16.msra.mxu1 %v444_v27 }
  0xd6   :  { %v111_v29 = vpop.f32.mrb[0].mxu0 }
  0xd7   :  { %v112_v30 = vadd.f32 %v326_v28, %v111_v29  ;;  %v367_v31 = vpop.f32.mrb[1].mxu0 }
  0xd9   :  { %v329_v32 = vmul.f32 -1.442695, %v112_v30 }
  0xdb   :  { %461 = vpow2.f32 %v329_v32 }
  0xe5   :  { %v462_v33 = vpop.eup %461 }
  0xe6   :  { %v135_v34 = vadd.f32 1.0, %v462_v33 }
  0xe8   :  { %463 = vrcp.f32 %v135_v34 }
  0xf2   :  { %v464_v35 = vpop.eup %463 }
  0xf3   :  { %401 = vmatmul.mubr.f32.vlgmr.msra.gmra.mrb[0].mxu1 %v464_v35 }
 0x1c6   :  { %v210_v49 = vpop.f32.mrb[0].mxu1 }
 0x1c7   :  { %v211_v50 = vadd.f32 %v330_v48, %v210_v49  ;;  %v402_v51 = vpop.f32.mrb[1].mxu1 }
 0x1c9   :  { %v331_v52 = vmul.f32 -1.442695, %v211_v50 }
 0x1cb   :  { %465 = vpow2.f32 %v331_v52 }
 0x1d5   :  { %v466_v53 = vpop.eup %465 }
 0x1d6   :  { %v226_v54 = vadd.f32 1.0, %v466_v53 }
 0x1d8   :  { %467 = vrcp.f32 %v226_v54 }
 0x1e2   :  { %v468_v55 = vpop.eup %467 }
 0x1e3   :  { %420 = vmatmul.mubr.msk.f32.vlgmr.msra.gmra.mrb[2].mxu0 %vm235_vm3, %v468_v55 }
 0x2b6   :  { %v305_v57 = vpop.f32.mrb[2].mxu0 }
 0x2b7   :  { %v306_v58 = vadd.f32 %v332_v56, %v305_v57  ;;  %v421_v59 = vpop.f32.mrb[3].mxu0 }
 0x2b9   :  { %v334_v60 = vmul.f32 -1.442695, %v306_v58 }
 0x2bb   :  { %469 = vpow2.f32 %v334_v60 }
 0x2c5   :  { %v470_v61 = vpop.eup %469 }
 0x2c6   :  { %v314_v62 = vadd.f32 1.0, %v470_v61 }
 0x2c8   :  { %471 = vrcp.f32 %v314_v62 }
 0x2d2   :  { %v472_v0 = vpop.eup %471 }
 0x2d3   :  { %v320_v1 = vsel %vm319_vm4, %v472_v0, %v306_v58 }
 0x2d4   :  { %321 = vst.msk [vmem:[%s636_s8] sm:$0xff] %vm37_vm1, %v320_v1 }

</bundles_post_ra>
